<compile_context>
chip_gen: v7x
topology: tpu7x:2x2x1
jax: 0.10.0
libtpu: 0.0.40
codegen_flags: <defaults>
</compile_context>

<pallas_src>
from collections import OrderedDict
from functools import partial

import jax
import jax.numpy as jnp
from jax import lax
from jax.experimental import pallas as pl
from jax.experimental.pallas import tpu as pltpu

LANE = 128  # TPU lane width; every matmul output / activation tile is exactly this wide.


# ------------------------------ Pallas kernel ------------------------------ #

def _fused_cnn_kernel(layer_dims, k_pad, x_ref, r_ref, q_ref, b_ref, f1_ref, f2_ref):
    """Whole 3-layer CNN in one invocation; intermediates stay in vregs/VMEM.

    layer_dims: tuple of (m_out, k_t) per layer, k_t = 3 * (rows of that layer's input).
    k_pad:      max k_t (shared contraction width of the packed Qcat).
    """
    a = x_ref[...]                                                   # (N*H0, 128) f32
    feats = []
    for l, (m_out, k_t) in enumerate(layer_dims):
        assert k_t == 3 * a.shape[0]
        # Stage A: one wide MXU matmul -> the three kh-shifted partial sums side by side in lanes.
        t_wide = jnp.dot(a, r_ref[l], preferred_element_type=jnp.float32)      # (M_in, 3*128)
        # Re-stack the three 128-lane blocks along sublanes (lane-tile-aligned slices + 8-aligned
        # concat => vreg selection only, no masked stores, no scratch traffic).
        parts = [t_wide[:, d * LANE:(d + 1) * LANE] for d in range(3)]
        if k_t < k_pad:
            # Zero rows matching the zero-padded Qcat columns (exact: 0 * 0 contributions).
            parts.append(jnp.zeros((k_pad - k_t, LANE), jnp.float32))
        t_stack = jnp.concatenate(parts, axis=0)                               # (k_pad, 128)
        # Stage B: one MXU matmul applying the kh/stride/batch selection, + bias + ReLU.
        y = jnp.dot(q_ref[l][:m_out], t_stack, preferred_element_type=jnp.float32)
        a = jnp.maximum(y + b_ref[l], 0.0)                                     # (m_out, 128)
        feats.append(a)
    # Lane-dense, fully aligned output stores: (N*Ho, 128) with Ho*Cout == 128.
    f1_ref[...] = feats[1].astype(f1_ref.dtype)
    f2_ref[...] = feats[2].astype(f2_ref.dtype)


# --------------------------- host-side constants ---------------------------- #

def _layer_constants(w_hwio, b, n, h_in, w_in, stride):
    """Fold 3x3 weights + stride + zero-padding selection into R (W dir) and Qcat (H dir).

    Conv with padding=1 reads padded coords (s*o + d); unpadded coord = s*o + d - 1,
    out-of-range coords have no matching selector entry -> exact zero padding, no data padding.
    """
    kh, kw, cin, cout = w_hwio.shape
    ho = (h_in - 1) // stride + 1
    wo = (w_in - 1) // stride + 1
    dt = jnp.float32
    assert w_in * cin <= LANE and wo * cout == LANE  # concrete backbone keeps tiles lane-dense

    # sel_w[j, w, v] = 1 iff w == stride*v + j - 1   (w in [0, W), zero-pad taps drop out)
    sel_w = (jnp.arange(w_in)[None, :, None]
             == stride * jnp.arange(wo)[None, None, :] + jnp.arange(kw)[:, None, None] - 1).astype(dt)
    r = jnp.einsum("jwv,djio->dwivo", sel_w, w_hwio.astype(dt)).reshape(kh, w_in * cin, wo * cout)
    r = jnp.pad(r, ((0, 0), (0, LANE - w_in * cin), (0, 0)))          # K rows padded to 128
    r_wide = jnp.concatenate([r[d] for d in range(kh)], axis=1)       # (128, 3*128)

    # sel_h[d, i, j] = 1 iff j == stride*i + d - 1 ; Qcat is block-diagonal over the folded batch.
    sel_h = (jnp.arange(h_in)[None, None, :]
             == stride * jnp.arange(ho)[None, :, None] + jnp.arange(kh)[:, None, None] - 1).astype(dt)
    qcat = jnp.einsum("nm,dij->nidmj", jnp.eye(n, dtype=dt), sel_h).reshape(n * ho, kh * n * h_in)

    brow = jnp.tile(b.astype(dt), (wo,)).reshape(1, wo * cout)        # (1, 128)
    return r_wide, qcat, brow, ho, wo


def _pack_constants(params, n, h0, w0):
    """Precompute all kernel constants ONCE (not per forward call)."""
    names, strides = ("conv1", "layer1", "layer2"), (1, 2, 2)
    h, w = h0, w0
    rs, qs, bs, dims, outs = [], [], [], [], []
    for name, s in zip(names, strides):
        wgt, b = params[name]["w"], params[name]["b"]
        r_wide, qcat, brow, ho, wo = _layer_constants(wgt, b, n, h, w, s)
        rs.append(r_wide); qs.append(qcat); bs.append(brow)
        dims.append((qcat.shape[0], qcat.shape[1]))          # (m_out, k_t)
        outs.append((ho, wo, wgt.shape[-1]))
        h, w = ho, wo
    k_pad = max(k for _, k in dims)
    m_max = max(m for m, _ in dims)
    q_all = jnp.stack([jnp.pad(q, ((0, m_max - q.shape[0]), (0, k_pad - q.shape[1]))) for q in qs])
    consts = {"r_all": jnp.stack(rs),      # (3, 128, 384)
              "q_all": q_all,              # (3, 32, 96)
              "b_all": jnp.stack(bs)}      # (3, 1, 128)
    meta = {"layer_dims": tuple(dims), "k_pad": k_pad, "layer_out": tuple(outs)}
    return consts, meta


# ------------------------- model parameters / forward ----------------------- #

def init_params(key):
    """Deterministic parameters. Weights stored as (Kh, Kw, Cin, Cout)."""
    k1, k2, k3 = jax.random.split(key, 3)
    return {
        "conv1":  {"w": 0.1 * jax.random.normal(k1, (3, 3, 4, 8),  jnp.float32),
                   "b": jnp.linspace(-0.1, 0.1, 8).astype(jnp.float32)},
        "layer1": {"w": 0.1 * jax.random.normal(k2, (3, 3, 8, 16), jnp.float32),
                   "b": jnp.linspace(-0.1, 0.1, 16).astype(jnp.float32)},
        "layer2": {"w": 0.1 * jax.random.normal(k3, (3, 3, 16, 32), jnp.float32),
                   "b": jnp.linspace(-0.1, 0.1, 32).astype(jnp.float32)},
    }


def make_fmodel_one2more(params, batch, in_hw):
    """Returns (jitted forward(consts, x_nchw) -> OrderedDict, packed consts)."""
    n = batch
    h0, w0 = in_hw
    c0 = params["conv1"]["w"].shape[2]
    consts, meta = _pack_constants(params, n, h0, w0)
    (_, _, _), (h1, w1, c1), (h2, w2, c2) = meta["layer_out"]

    kernel = partial(_fused_cnn_kernel, meta["layer_dims"], meta["k_pad"])
    vmem = pl.BlockSpec(memory_space=pltpu.MemorySpace.VMEM)
    call = pl.pallas_call(
        kernel,
        out_shape=(jax.ShapeDtypeStruct((n * h1, w1 * c1), jnp.float32),   # feat1 (16, 128)
                   jax.ShapeDtypeStruct((n * h2, w2 * c2), jnp.float32)),  # feat2 (8, 128)
        in_specs=[vmem] * 4,          # x, r_all, q_all, b_all  -> 4 DMAs total
        out_specs=(vmem, vmem),
    )

    def forward(consts, x_nchw):
        # NCHW -> flattened NHWC matrix (N*H0, W0*C0), lane-padded to 128 (zero cols x zero R rows).
        x2d = jnp.transpose(x_nchw, (0, 2, 3, 1)).reshape(n * h0, w0 * c0).astype(jnp.float32)
        x2d = jnp.pad(x2d, ((0, 0), (0, LANE - w0 * c0)))
        f1_2d, f2_2d = call(x2d, consts["r_all"], consts["q_all"], consts["b_all"])
        out = OrderedDict()
        out["feat1"] = jnp.transpose(f1_2d.reshape(n, h1, w1, c1), (0, 3, 1, 2))
        out["feat2"] = jnp.transpose(f2_2d.reshape(n, h2, w2, c2), (0, 3, 1, 2))
        return out

    return jax.jit(forward), consts


# ------------------------------- reference ---------------------------------- #

def _conv3x3_relu_ref(x_nhwc, w_hwio, b, stride):
    y = lax.conv_general_dilated(
        x_nhwc, w_hwio, window_strides=(stride, stride), padding=((1, 1), (1, 1)),
        dimension_numbers=("NHWC", "HWIO", "NHWC"))
    return jnp.maximum(y + b, 0.0)


def _forward_ref(params, x_nchw):
    x = jnp.transpose(x_nchw, (0, 2, 3, 1))
    x = _conv3x3_relu_ref(x, params["conv1"]["w"], params["conv1"]["b"], 1)
    f1 = _conv3x3_relu_ref(x, params["layer1"]["w"], params["layer1"]["b"], 2)
    f2 = _conv3x3_relu_ref(f1, params["layer2"]["w"], params["layer2"]["b"], 2)
    return OrderedDict(feat1=jnp.transpose(f1, (0, 3, 1, 2)),
                       feat2=jnp.transpose(f2, (0, 3, 1, 2)))


# --------------------------------- main -------------------------------------- #

if __name__ == "__main__":
    key = jax.random.PRNGKey(0)
    kp, kx = jax.random.split(key)
    params = init_params(kp)

    # input: NCHW, batch=2, channels=4, spatial=16
    x = jax.random.normal(kx, (2, 4, 16, 16), jnp.float32)

    fwd, consts = make_fmodel_one2more(params, batch=2, in_hw=(16, 16))
    out = fwd(consts, x)
    jax.block_until_ready(out["feat2"])

    ref = _forward_ref(params, x)
    assert out["feat1"].shape == (2, 16, 8, 8)
    assert out["feat2"].shape == (2, 32, 4, 4)
    assert jnp.allclose(out["feat1"], ref["feat1"], atol=1e-4, rtol=1e-4)
    assert jnp.allclose(out["feat2"], ref["feat2"], atol=1e-4, rtol=1e-4)

    print("KERNEL_OK")
</pallas_src>

<mosaic_0001>
module attributes {stable_mosaic.version = 11 : i64} {
  func.func @_fused_cnn_kernel(%arg0: memref<32x128xf32, #tpu.memory_space<vmem>>, %arg1: memref<3x128x384xf32, #tpu.memory_space<vmem>>, %arg2: memref<3x32x96xf32, #tpu.memory_space<vmem>>, %arg3: memref<3x1x128xf32, #tpu.memory_space<vmem>>, %arg4: memref<16x128xf32, #tpu.memory_space<vmem>>, %arg5: memref<8x128xf32, #tpu.memory_space<vmem>>) attributes {dimension_semantics = [], scalar_prefetch = 0 : i64, scratch_operands = 0 : i64, tpu.core_type = #tpu.core_type<tc>} {
    %c0 = arith.constant 0 : index
    %c0_0 = arith.constant 0 : index
    %0 = vector.load %arg0[%c0, %c0_0] : memref<32x128xf32, #tpu.memory_space<vmem>>, vector<32x128xf32>
    %c0_1 = arith.constant 0 : index
    %c0_2 = arith.constant 0 : index
    %c0_3 = arith.constant 0 : index
    %1 = vector.load %arg1[%c0_1, %c0_2, %c0_3] : memref<3x128x384xf32, #tpu.memory_space<vmem>>, vector<1x128x384xf32>
    %2 = vector.shape_cast %1 : vector<1x128x384xf32> to vector<128x384xf32>
    %cst = arith.constant dense<0.000000e+00> : vector<32x384xf32>
    %3 = tpu.matmul %0, %2, %cst {dimension_numbers = #tpu.dot_dimension_numbers<[1], [0], [0], [1], [0, 0, 1, 1], [], []>} : vector<32x128xf32>, vector<128x384xf32>, vector<32x384xf32> -> vector<32x384xf32>
    %4 = vector.extract_strided_slice %3 {offsets = [0, 0], sizes = [32, 128], strides = [1, 1]} : vector<32x384xf32> to vector<32x128xf32>
    %5 = vector.extract_strided_slice %3 {offsets = [0, 128], sizes = [32, 128], strides = [1, 1]} : vector<32x384xf32> to vector<32x128xf32>
    %6 = vector.extract_strided_slice %3 {offsets = [0, 256], sizes = [32, 128], strides = [1, 1]} : vector<32x384xf32> to vector<32x128xf32>
    %7 = tpu.concatenate %4, %5, %6 in 0 : vector<32x128xf32>, vector<32x128xf32>, vector<32x128xf32> -> vector<96x128xf32>
    %c0_4 = arith.constant 0 : index
    %c0_5 = arith.constant 0 : index
    %c0_6 = arith.constant 0 : index
    %8 = vector.load %arg2[%c0_4, %c0_5, %c0_6] : memref<3x32x96xf32, #tpu.memory_space<vmem>>, vector<1x32x96xf32>
    %9 = vector.shape_cast %8 : vector<1x32x96xf32> to vector<32x96xf32>
    %cst_7 = arith.constant dense<0.000000e+00> : vector<32x128xf32>
    %10 = tpu.matmul %9, %7, %cst_7 {dimension_numbers = #tpu.dot_dimension_numbers<[1], [0], [0], [1], [0, 0, 1, 1], [], []>} : vector<32x96xf32>, vector<96x128xf32>, vector<32x128xf32> -> vector<32x128xf32>
    %c0_8 = arith.constant 0 : index
    %c0_9 = arith.constant 0 : index
    %c0_10 = arith.constant 0 : index
    %11 = vector.load %arg3[%c0_8, %c0_9, %c0_10] : memref<3x1x128xf32, #tpu.memory_space<vmem>>, vector<1x1x128xf32>
    %12 = vector.shape_cast %11 : vector<1x1x128xf32> to vector<1x128xf32>
    %13 = vector.broadcast %12 : vector<1x128xf32> to vector<32x128xf32>
    %14 = arith.addf %10, %13 : vector<32x128xf32>
    %cst_11 = arith.constant 0.000000e+00 : f32
    %15 = vector.broadcast %cst_11 : f32 to vector<32x128xf32>
    %16 = arith.maximumf %14, %15 : vector<32x128xf32>
    %c1 = arith.constant 1 : index
    %c0_12 = arith.constant 0 : index
    %c0_13 = arith.constant 0 : index
    %17 = vector.load %arg1[%c1, %c0_12, %c0_13] : memref<3x128x384xf32, #tpu.memory_space<vmem>>, vector<1x128x384xf32>
    %18 = vector.shape_cast %17 : vector<1x128x384xf32> to vector<128x384xf32>
    %cst_14 = arith.constant dense<0.000000e+00> : vector<32x384xf32>
    %19 = tpu.matmul %16, %18, %cst_14 {dimension_numbers = #tpu.dot_dimension_numbers<[1], [0], [0], [1], [0, 0, 1, 1], [], []>} : vector<32x128xf32>, vector<128x384xf32>, vector<32x384xf32> -> vector<32x384xf32>
    %20 = vector.extract_strided_slice %19 {offsets = [0, 0], sizes = [32, 128], strides = [1, 1]} : vector<32x384xf32> to vector<32x128xf32>
    %21 = vector.extract_strided_slice %19 {offsets = [0, 128], sizes = [32, 128], strides = [1, 1]} : vector<32x384xf32> to vector<32x128xf32>
    %22 = vector.extract_strided_slice %19 {offsets = [0, 256], sizes = [32, 128], strides = [1, 1]} : vector<32x384xf32> to vector<32x128xf32>
    %23 = tpu.concatenate %20, %21, %22 in 0 : vector<32x128xf32>, vector<32x128xf32>, vector<32x128xf32> -> vector<96x128xf32>
    %c1_15 = arith.constant 1 : index
    %c0_16 = arith.constant 0 : index
    %c0_17 = arith.constant 0 : index
    %24 = vector.load %arg2[%c1_15, %c0_16, %c0_17] : memref<3x32x96xf32, #tpu.memory_space<vmem>>, vector<1x32x96xf32>
    %25 = vector.shape_cast %24 : vector<1x32x96xf32> to vector<32x96xf32>
    %26 = vector.extract_strided_slice %25 {offsets = [0, 0], sizes = [16, 96], strides = [1, 1]} : vector<32x96xf32> to vector<16x96xf32>
    %cst_18 = arith.constant dense<0.000000e+00> : vector<16x128xf32>
    %27 = tpu.matmul %26, %23, %cst_18 {dimension_numbers = #tpu.dot_dimension_numbers<[1], [0], [0], [1], [0, 0, 1, 1], [], []>} : vector<16x96xf32>, vector<96x128xf32>, vector<16x128xf32> -> vector<16x128xf32>
    %c1_19 = arith.constant 1 : index
    %c0_20 = arith.constant 0 : index
    %c0_21 = arith.constant 0 : index
    %28 = vector.load %arg3[%c1_19, %c0_20, %c0_21] : memref<3x1x128xf32, #tpu.memory_space<vmem>>, vector<1x1x128xf32>
    %29 = vector.shape_cast %28 : vector<1x1x128xf32> to vector<1x128xf32>
    %30 = vector.broadcast %29 : vector<1x128xf32> to vector<16x128xf32>
    %31 = arith.addf %27, %30 : vector<16x128xf32>
    %cst_22 = arith.constant 0.000000e+00 : f32
    %32 = vector.broadcast %cst_22 : f32 to vector<16x128xf32>
    %33 = arith.maximumf %31, %32 : vector<16x128xf32>
    %c2 = arith.constant 2 : index
    %c0_23 = arith.constant 0 : index
    %c0_24 = arith.constant 0 : index
    %34 = vector.load %arg1[%c2, %c0_23, %c0_24] : memref<3x128x384xf32, #tpu.memory_space<vmem>>, vector<1x128x384xf32>
    %35 = vector.shape_cast %34 : vector<1x128x384xf32> to vector<128x384xf32>
    %cst_25 = arith.constant dense<0.000000e+00> : vector<16x384xf32>
    %36 = tpu.matmul %33, %35, %cst_25 {dimension_numbers = #tpu.dot_dimension_numbers<[1], [0], [0], [1], [0, 0, 1, 1], [], []>} : vector<16x128xf32>, vector<128x384xf32>, vector<16x384xf32> -> vector<16x384xf32>
    %37 = vector.extract_strided_slice %36 {offsets = [0, 0], sizes = [16, 128], strides = [1, 1]} : vector<16x384xf32> to vector<16x128xf32>
    %38 = vector.extract_strided_slice %36 {offsets = [0, 128], sizes = [16, 128], strides = [1, 1]} : vector<16x384xf32> to vector<16x128xf32>
    %39 = vector.extract_strided_slice %36 {offsets = [0, 256], sizes = [16, 128], strides = [1, 1]} : vector<16x384xf32> to vector<16x128xf32>
    %cst_26 = arith.constant 0.000000e+00 : f32
    %40 = vector.broadcast %cst_26 : f32 to vector<48x128xf32>
    %41 = tpu.concatenate %37, %38, %39, %40 in 0 : vector<16x128xf32>, vector<16x128xf32>, vector<16x128xf32>, vector<48x128xf32> -> vector<96x128xf32>
    %c2_27 = arith.constant 2 : index
    %c0_28 = arith.constant 0 : index
    %c0_29 = arith.constant 0 : index
    %42 = vector.load %arg2[%c2_27, %c0_28, %c0_29] : memref<3x32x96xf32, #tpu.memory_space<vmem>>, vector<1x32x96xf32>
    %43 = vector.shape_cast %42 : vector<1x32x96xf32> to vector<32x96xf32>
    %44 = vector.extract_strided_slice %43 {offsets = [0, 0], sizes = [8, 96], strides = [1, 1]} : vector<32x96xf32> to vector<8x96xf32>
    %cst_30 = arith.constant dense<0.000000e+00> : vector<8x128xf32>
    %45 = tpu.matmul %44, %41, %cst_30 {dimension_numbers = #tpu.dot_dimension_numbers<[1], [0], [0], [1], [0, 0, 1, 1], [], []>} : vector<8x96xf32>, vector<96x128xf32>, vector<8x128xf32> -> vector<8x128xf32>
    %c2_31 = arith.constant 2 : index
    %c0_32 = arith.constant 0 : index
    %c0_33 = arith.constant 0 : index
    %46 = vector.load %arg3[%c2_31, %c0_32, %c0_33] : memref<3x1x128xf32, #tpu.memory_space<vmem>>, vector<1x1x128xf32>
    %47 = vector.shape_cast %46 : vector<1x1x128xf32> to vector<1x128xf32>
    %48 = vector.broadcast %47 : vector<1x128xf32> to vector<8x128xf32>
    %49 = arith.addf %45, %48 : vector<8x128xf32>
    %cst_34 = arith.constant 0.000000e+00 : f32
    %50 = vector.broadcast %cst_34 : f32 to vector<8x128xf32>
    %51 = arith.maximumf %49, %50 : vector<8x128xf32>
    %c0_35 = arith.constant 0 : index
    %c0_36 = arith.constant 0 : index
    %52 = vector.load %arg4[%c0_35, %c0_36] : memref<16x128xf32, #tpu.memory_space<vmem>>, vector<16x128xf32>
    tpu.vector_store %arg4[%c0_35, %c0_36], %33 {strides = array<i32>} : memref<16x128xf32, #tpu.memory_space<vmem>>, vector<16x128xf32>,
    %c0_37 = arith.constant 0 : index
    %c0_38 = arith.constant 0 : index
    %53 = vector.load %arg5[%c0_37, %c0_38] : memref<8x128xf32, #tpu.memory_space<vmem>>, vector<8x128xf32>
    tpu.vector_store %arg5[%c0_37, %c0_38], %51 {strides = array<i32>} : memref<8x128xf32, #tpu.memory_space<vmem>>, vector<8x128xf32>,
    return
  }
}

</mosaic_0001>

<bundles_post_ra>
// kernel: forward.1
= control target key start
LH: loop header
LB: loop body
LE: loop exit
PB: predicated region body
PF: predicated region fallthrough
CT: control target
= control target key end

     0   :  { %11 = vsyncpa [#allocation3], 0  ;;  %s1558_s18 = smov [#allocation2]   ;;  %s1675_s0 = inlined_call_operand.vmem [shape: f32[32,128], index: 0, kind: input, shape index: {}]   ;;  %s1676_s1 = inlined_call_operand.hbm [shape: f32[3,128,384], index: 1, kind: input, shape index: {}]   ;;  %s1677_s2 = inlined_call_operand.vmem [shape: f32[3,32,96], index: 2, kind: input, shape index: {}]   ;;  %s1678_s3 = inlined_call_operand.vmem [shape: f32[3,1,128], index: 3, kind: input, shape index: {}]   ;;  %s1679_s4 = inlined_call_operand.vmem [shape: f32[16,128], index: 4, kind: output, shape index: {0}]   ;;  %s1680_s5 = inlined_call_operand.vmem [shape: f32[8,128], index: 5, kind: output, shape index: {1}]  }
   0x1   :  { %s19_s19 = sshll.u32 %s1558_s18, 4  ;;  %s1534_s22 = scalar_lea.hbm %s1676_s1, 18432  ;;  %s20_s19 = int_to_ptr.vmem [resolvable:$true] %s19_s19 }
   0x2   :  { %p1535_p0 = scmp.ne.s32.totalorder %s1676_s1, %s1534_s22  ;;  %p1538_p1 = scmp.lt.u32.totalorder %s1534_s22, %s1676_s1 }
   0x4   :  { %p1540_p2 = pnand %p1538_p1, %p1535_p0 }
   0x6   :  { %1543 = shalt.err (!%p1540_p2)
}
   0x7   :  { %s1544_s27 = scalar_lea.vmem %s20_s19, 18432  ;;  %p1549_p4 = scmp.lt.s32.totalorder %s20_s19, %s20_s19 }
   0x8   :  { %p1545_p3 = scmp.ne.s32.totalorder %s20_s19, %s1544_s27  ;;  %p1550_p5 = scmp.lt.s32.totalorder %s1544_s27, %s1544_s27 }
   0xa   :  { %p1551_p6 = por %p1550_p5, %p1549_p4 }
   0xc   :  { %p1552_p7 = pnand %p1551_p6, %p1545_p3 }
   0xe   :  { %1555 = shalt.err (!%p1552_p7)
}
   0xf   :  { %s1559_s28 = smov 384   ;;  %s1560_s29 = smov 24  }
  0x10   :  { %25 = dma.hbm_to_vmem [thread:$0]  %s1676_s1, 18432, %s20_s19, [#allocation3], %s1559_s28, %s1559_s28, %s1560_s29  }
  0x11   :  { %1556 = dma.done.wait [#allocation3], 18432  }
  0x12   :  { %1557 = vsyncadd [#allocation3], 4294948864  ;;  %v1561_v0 = vmov 0.0   ;;  %v38_v1 = vld [vmem:[#allocation2 + $0x8] sm:$0xff]  ;;  %v41_v2 = vld [vmem:[#allocation2 + $0x20] sm:$0xff]  ;;  %vm270_vm0 = vcmask 785408  }
  0x13   :  { %149 = vmatprep.mubr.f32.mxu0 %v1561_v0  ;;  %v37_v3 = vld [vmem:[#allocation2] sm:$0xff]  ;;  %v1279_v4 = vpack.c.bf16 %v41_v2, %v38_v1  ;;  %v40_v5 = vld [vmem:[#allocation2 + $0x18] sm:$0xff]  ;;  %v47_v7 = vld [vmem:[#allocation2 + $0x50] sm:$0xff]  ;;  %vm1563_vm1 = vmmov 0  }
  0x14   :  { %v44_v6 = vld [vmem:[#allocation2 + $0x38] sm:$0xff]  ;;  %v1281_v8 = vpack.c.bf16 %v40_v5, %v37_v3  ;;  %v43_v10 = vld [vmem:[#allocation2 + $0x30] sm:$0xff]  ;;  %v46_v11 = vld [vmem:[#allocation2 + $0x48] sm:$0xff] }
  0x15   :  { %v1283_v9 = vpack.c.bf16 %v47_v7, %v44_v6  ;;  %v50_v12 = vld [vmem:[#allocation2 + $0x68] sm:$0xff]  ;;  %1280 = vmatprep.subr.bf16.mxu0 %v1279_v4  ;;  %v53_v13 = vld [vmem:[#allocation2 + $0x80] sm:$0xff]  ;;  %v1285_v14 = vpack.c.bf16 %v46_v11, %v43_v10  ;;  %v52_v17 = vld [vmem:[#allocation2 + $0x78] sm:$0xff] }
  0x16   :  { %1282 = vmatpush1.bf16.msra.mxu0 %v1281_v8  ;;  %v1287_v15 = vpack.c.bf16 %v53_v13, %v50_v12  ;;  %v49_v16 = vld [vmem:[#allocation2 + $0x60] sm:$0xff]  ;;  %v56_v18 = vld [vmem:[#allocation2 + $0x98] sm:$0xff]  ;;  %v59_v19 = vld [vmem:[#allocation2 + $0xb0] sm:$0xff] }
  0x17   :  { %1284 = vmatprep.subr.bf16.mxu0 %v1283_v9  ;;  %v1289_v20 = vpack.c.bf16 %v52_v17, %v49_v16  ;;  %v39_v21 = vld [vmem:[#allocation2 + $0x10] sm:$0xff]  ;;  %v42_v22 = vld [vmem:[#allocation2 + $0x28] sm:$0xff]  ;;  %v1291_v23 = vpack.c.bf16 %v59_v19, %v56_v18  ;;  %v65_v28 = vld [vmem:[#allocation2 + $0xe0] sm:$0xff] }
  0x18   :  { %v55_v24 = vld [vmem:[#allocation2 + $0x90] sm:$0xff]  ;;  %v58_v25 = vld [vmem:[#allocation2 + $0xa8] sm:$0xff]  ;;  %v1311_v27 = vpack.c.bf16 %v42_v22, %v39_v21  ;;  %v45_v29 = vld [vmem:[#allocation2 + $0x40] sm:$0xff] }
  0x19   :  { %v62_v26 = vld [vmem:[#allocation2 + $0xc8] sm:$0xff]  ;;  %v48_v30 = vld [vmem:[#allocation2 + $0x58] sm:$0xff]  ;;  %v1293_v32 = vpack.c.bf16 %v58_v25, %v55_v24  ;;  %v61_v33 = vld [vmem:[#allocation2 + $0xc0] sm:$0xff] }
  0x1a   :  { %1286 = vmatpush1.bf16.msra.mxu0 %v1285_v14  ;;  %1312 = vmatprep.subr.bf16.mxu1 %v1311_v27  ;;  %v1315_v31 = vpack.c.bf16 %v48_v30, %v45_v29  ;;  %v51_v34 = vld [vmem:[#allocation2 + $0x70] sm:$0xff]  ;;  %v54_v35 = vld [vmem:[#allocation2 + $0x88] sm:$0xff]  ;;  %v1295_v36 = vpack.c.bf16 %v65_v28, %v62_v26  ;;  %v64_v37 = vld [vmem:[#allocation2 + $0xd8] sm:$0xff] }
  0x1b   :  { %1288 = vmatprep.subr.bf16.mxu0 %v1287_v15  ;;  %1314 = vmatpush3.bf16.msra.mxu1 %v1311_v27  ;;  %v68_v38 = vld [vmem:[#allocation2 + $0xf8] sm:$0xff]  ;;  %v1319_v39 = vpack.c.bf16 %v54_v35, %v51_v34  ;;  %v33_v40 = vld [vmem:[%s1675_s0] sm:$0xff]  ;;  %v71_v41 = vld [vmem:[#allocation2 + $0x110] sm:$0xff]  ;;  %v1297_v44 = vpack.c.bf16 %v64_v37, %v61_v33 }
  0x1c   :  { %1316 = vmatprep.subr.bf16.mxu1 %v1315_v31  ;;  %v57_v42 = vld [vmem:[#allocation2 + $0xa0] sm:$0xff]  ;;  %v60_v43 = vld [vmem:[#allocation2 + $0xb8] sm:$0xff]  ;;  %1128 = vmatprep.mubr.f32.mxu1 %v33_v40  ;;  %v1299_v45 = vpack.c.bf16 %v71_v41, %v68_v38  ;;  %v67_v46 = vld [vmem:[#allocation2 + $0xf0] sm:$0xff] }
  0x1d   :  { %v70_v47 = vld [vmem:[#allocation2 + $0x108] sm:$0xff]  ;;  %v1323_v49 = vpack.c.bf16 %v60_v43, %v57_v42  ;;  %v77_v50 = vld [vmem:[#allocation2 + $0x140] sm:$0xff]  ;;  %v63_v51 = vld [vmem:[#allocation2 + $0xd0] sm:$0xff] }
  0x1e   :  { %1290 = vmatpush1.bf16.msra.mxu0 %v1289_v20  ;;  %v74_v48 = vld [vmem:[#allocation2 + $0x128] sm:$0xff]  ;;  %v1301_v53 = vpack.c.bf16 %v70_v47, %v67_v46  ;;  %v73_v55 = vld [vmem:[#allocation2 + $0x120] sm:$0xff]  ;;  %v76_v56 = vld [vmem:[#allocation2 + $0x138] sm:$0xff] }
  0x1f   :  { %1292 = vmatprep.subr.bf16.mxu0 %v1291_v23  ;;  %1318 = vmatpush3.bf16.msra.mxu1 %v1315_v31  ;;  %v66_v52 = vld [vmem:[#allocation2 + $0xe8] sm:$0xff]  ;;  %v1303_v54 = vpack.c.bf16 %v77_v50, %v74_v48  ;;  %v80_v57 = vld [vmem:[#allocation2 + $0x158] sm:$0xff]  ;;  %v83_v59 = vld [vmem:[#allocation2 + $0x170] sm:$0xff]  ;;  %v1305_v62 = vpack.c.bf16 %v76_v56, %v73_v55 }
  0x20   :  { %1320 = vmatprep.subr.bf16.mxu1 %v1319_v39  ;;  %v1327_v58 = vpack.c.bf16 %v66_v52, %v63_v51  ;;  %v69_v60 = vld [vmem:[#allocation2 + $0x100] sm:$0xff]  ;;  %v72_v61 = vld [vmem:[#allocation2 + $0x118] sm:$0xff]  ;;  %v1307_v63 = vpack.c.bf16 %v83_v59, %v80_v57  ;;  %v79_v1 = vld [vmem:[#allocation2 + $0x150] sm:$0xff] }
  0x21   :  { %v82_v2 = vld [vmem:[#allocation2 + $0x168] sm:$0xff]  ;;  %v1331_v3 = vpack.c.bf16 %v72_v61, %v69_v60  ;;  %v75_v4 = vld [vmem:[#allocation2 + $0x130] sm:$0xff]  ;;  %v81_v8 = vld [vmem:[#allocation2 + $0x160] sm:$0xff] }
  0x22   :  { %1294 = vmatpush1.bf16.msra.mxu0 %v1293_v32  ;;  %v78_v5 = vld [vmem:[#allocation2 + $0x148] sm:$0xff]  ;;  %v1309_v6 = vpack.c.bf16 %v82_v2, %v79_v1  ;;  %v84_v9 = vld [vmem:[#allocation2 + $0x178] sm:$0xff]  ;;  %v35_v12 = vld [vmem:[%s1675_s0 + $0x10] sm:$0xff] }
  0x23   :  { %1296 = vmatprep.subr.bf16.mxu0 %v1295_v36  ;;  %1322 = vmatpush3.bf16.msra.mxu1 %v1319_v39  ;;  %v1335_v7 = vpack.c.bf16 %v78_v5, %v75_v4  ;;  %v1339_v10 = vpack.c.bf16 %v84_v9, %v81_v8  ;;  %v34_v11 = vld [vmem:[%s1675_s0 + $0x8] sm:$0xff]  ;;  %v36_v13 = vld [vmem:[%s1675_s0 + $0x18] sm:$0xff]  ;;  %v259_v14 = vld [vmem:[%s1677_s2] sm:$0xff] }
  0x24   :  { %1324 = vmatprep.subr.bf16.mxu1 %v1323_v49  ;;  %v374_v15 = vld [vmem:[#allocation2 + $0x188] sm:$0xff]  ;;  %v377_v16 = vld [vmem:[#allocation2 + $0x1a0] sm:$0xff]  ;;  %v376_v19 = vld [vmem:[#allocation2 + $0x198] sm:$0xff] }
  0x25   :  { %v373_v17 = vld [vmem:[#allocation2 + $0x180] sm:$0xff]  ;;  %v1367_v18 = vpack.c.bf16 %v377_v16, %v374_v15  ;;  %v380_v21 = vld [vmem:[#allocation2 + $0x1b8] sm:$0xff]  ;;  %v383_v22 = vld [vmem:[#allocation2 + $0x1d0] sm:$0xff] }
  0x26   :  { %1298 = vmatpush1.bf16.msra.mxu0 %v1297_v44  ;;  %v1369_v20 = vpack.c.bf16 %v376_v19, %v373_v17  ;;  %v379_v23 = vld [vmem:[#allocation2 + $0x1b0] sm:$0xff]  ;;  %v1371_v24 = vpack.c.bf16 %v383_v22, %v380_v21  ;;  %v382_v25 = vld [vmem:[#allocation2 + $0x1c8] sm:$0xff]  ;;  %v389_v28 = vld [vmem:[#allocation2 + $0x200] sm:$0xff] }
  0x27   :  { %1300 = vmatprep.subr.bf16.mxu0 %v1299_v45  ;;  %1326 = vmatpush3.bf16.msra.mxu1 %v1323_v49  ;;  %v1373_v26 = vpack.c.bf16 %v382_v25, %v379_v23  ;;  %v386_v27 = vld [vmem:[#allocation2 + $0x1e8] sm:$0xff]  ;;  %v385_v30 = vld [vmem:[#allocation2 + $0x1e0] sm:$0xff]  ;;  %v388_v31 = vld [vmem:[#allocation2 + $0x1f8] sm:$0xff] }
  0x28   :  { %1328 = vmatprep.subr.bf16.mxu1 %v1327_v58  ;;  %v1375_v29 = vpack.c.bf16 %v389_v28, %v386_v27  ;;  %v392_v32 = vld [vmem:[#allocation2 + $0x218] sm:$0xff]  ;;  %v395_v33 = vld [vmem:[#allocation2 + $0x230] sm:$0xff]  ;;  %v1377_v34 = vpack.c.bf16 %v388_v31, %v385_v30  ;;  %v394_v37 = vld [vmem:[#allocation2 + $0x228] sm:$0xff] }
  0x29   :  { %v1379_v35 = vpack.c.bf16 %v395_v33, %v392_v32  ;;  %v391_v36 = vld [vmem:[#allocation2 + $0x210] sm:$0xff]  ;;  %v398_v38 = vld [vmem:[#allocation2 + $0x248] sm:$0xff]  ;;  %v401_v39 = vld [vmem:[#allocation2 + $0x260] sm:$0xff] }
  0x2a   :  { %1302 = vmatpush1.bf16.msra.mxu0 %v1301_v53  ;;  %v1383_v41 = vpack.c.bf16 %v401_v39, %v398_v38  ;;  %v397_v42 = vld [vmem:[#allocation2 + $0x240] sm:$0xff]  ;;  %v400_v43 = vld [vmem:[#allocation2 + $0x258] sm:$0xff]  ;;  %v407_v45 = vld [vmem:[#allocation2 + $0x290] sm:$0xff] }
  0x2b   :  { %1304 = vmatprep.subr.bf16.mxu0 %v1303_v54  ;;  %1330 = vmatpush3.bf16.msra.mxu1 %v1327_v58  ;;  %v404_v44 = vld [vmem:[#allocation2 + $0x278] sm:$0xff]  ;;  %v1385_v46 = vpack.c.bf16 %v400_v43, %v397_v42  ;;  %v403_v48 = vld [vmem:[#allocation2 + $0x270] sm:$0xff]  ;;  %v406_v49 = vld [vmem:[#allocation2 + $0x288] sm:$0xff] }
  0x2c   :  { %1332 = vmatprep.subr.bf16.mxu1 %v1331_v3  ;;  %v1387_v47 = vpack.c.bf16 %v407_v45, %v404_v44  ;;  %v410_v50 = vld [vmem:[#allocation2 + $0x2a8] sm:$0xff]  ;;  %v413_v51 = vld [vmem:[#allocation2 + $0x2c0] sm:$0xff]  ;;  %v1389_v52 = vpack.c.bf16 %v406_v49, %v403_v48  ;;  %v412_v55 = vld [vmem:[#allocation2 + $0x2b8] sm:$0xff] }
  0x2d   :  { %v1391_v53 = vpack.c.bf16 %v413_v51, %v410_v50  ;;  %v409_v54 = vld [vmem:[#allocation2 + $0x2a0] sm:$0xff]  ;;  %v384_v16 = vld [vmem:[#allocation2 + $0x1d8] sm:$0xff]  ;;  %v260_v17 = vld [vmem:[%s1677_s2 + $0x8] sm:$0xff] }
  0x2e   :  { %1306 = vmatpush1.bf16.msra.mxu0 %v1305_v62  ;;  %v1393_v56 = vpack.c.bf16 %v412_v55, %v409_v54  ;;  %v381_v15 = vld [vmem:[#allocation2 + $0x1c0] sm:$0xff]  ;;  %v390_v21 = vld [vmem:[#allocation2 + $0x208] sm:$0xff]  ;;  %v262_v22 = vld [vmem:[%s1677_s2 + $0x18] sm:$0xff] }
  0x2f   :  { %1308 = vmatprep.subr.bf16.mxu0 %v1307_v63  ;;  %1334 = vmatpush3.bf16.msra.mxu1 %v1331_v3  ;;  %v1403_v19 = vpack.c.bf16 %v384_v16, %v381_v15  ;;  %v396_v25 = vld [vmem:[#allocation2 + $0x238] sm:$0xff]  ;;  %v399_v27 = vld [vmem:[#allocation2 + $0x250] sm:$0xff]  ;;  %v402_v28 = vld [vmem:[#allocation2 + $0x268] sm:$0xff] }
  0x30   :  { %1336 = vmatprep.subr.bf16.mxu1 %v1335_v7  ;;  %v405_v30 = vld [vmem:[#allocation2 + $0x280] sm:$0xff]  ;;  %v408_v31 = vld [vmem:[#allocation2 + $0x298] sm:$0xff]  ;;  %v411_v33 = vld [vmem:[#allocation2 + $0x2b0] sm:$0xff] }
  0x31   :  { %v1419_v32 = vpack.c.bf16 %v408_v31, %v405_v30  ;;  %v415_v39 = vld [vmem:[#allocation2 + $0x2d0] sm:$0xff]  ;;  %v417_v42 = vld [vmem:[#allocation2 + $0x2e0] sm:$0xff]  ;;  %v420_v43 = vld [vmem:[#allocation2 + $0x2f8] sm:$0xff] }
  0x32   :  { %1310 = vmatpush1.bf16.msra.mxu0 %v1309_v6  ;;  %v1427_v44 = vpack.c.bf16 %v420_v43, %v417_v42  ;;  %v986_v45 = vld [vmem:[%s1678_s3] ss:$0 sm:$0xff]  ;;  %v712_v15 = vld [vmem:[#allocation2 + $0x3b0] sm:$0xff]  ;;  %v723_v30 = vld [vmem:[#allocation2 + $0x408] sm:$0xff] }
  0x33   :  { %1338 = vmatpush3.bf16.msra.mxu1 %v1335_v7  ;;  %v708_v16 = vld [vmem:[#allocation2 + $0x390] sm:$0xff] }
  0x34   :  { %1340 = vmatprep.subr.bf16.mxu1 %v1339_v10 }
  0x35   :  { %150 = vmatmul.mubr.f32.vlgmr.msra.gmra.mrb[0].mxu0 %v33_v40  ;;  %v1381_v40 = vpack.c.bf16 %v394_v37, %v391_v36  ;;  %v416_v36 = vld [vmem:[#allocation2 + $0x2d8] sm:$0xff]  ;;  %v419_v37 = vld [vmem:[#allocation2 + $0x2f0] sm:$0xff] }
  0x36   :  { %155 = vmatprep.mubr.f32.mxu0 %v1561_v0  ;;  %v1395_v38 = vpack.c.bf16 %v419_v37, %v416_v36  ;;  %v729_v36 = vld [vmem:[#allocation2 + $0x438] sm:$0xff] }
  0x37   :  { %1342 = vmatpush3.bf16.msra.mxu1 %v1339_v10 }
  0x38   :  { %1368 = vmatprep.subr.bf16.mxu1 %v1367_v18  ;;  %v261_v18 = vld [vmem:[%s1677_s2 + $0x10] sm:$0xff] }
  0x39   :  { %156 = vmatmul.mubr.f32.gmra.mrb[2].mxu0 %v34_v11 }
  0x3a   :  { %161 = vmatprep.mubr.f32.mxu0 %v1561_v0  ;;  %1129 = vmatmul.mubr.f32.vlgmr.msra.gmra.mrb[0].mxu1 %v34_v11 }
  0x3b   :  { %1131 = vmatprep.mubr.f32.mxu1 %v35_v12  ;;  %1370 = vmatpush1.bf16.msra.mxu1 %v1369_v20  ;;  %v387_v20 = vld [vmem:[#allocation2 + $0x1f0] sm:$0xff] }
  0x3c   :  { %1372 = vmatprep.subr.bf16.mxu1 %v1371_v24  ;;  %v1407_v23 = vpack.c.bf16 %v390_v21, %v387_v20  ;;  %v393_v24 = vld [vmem:[#allocation2 + $0x220] sm:$0xff]  ;;  %v715_v20 = vld [vmem:[#allocation2 + $0x3c8] sm:$0xff] }
  0x3d   :  { %162 = vmatmul.mubr.f32.gmra.mrb[4].mxu0 %v35_v12  ;;  %v375_v12 = vld [vmem:[#allocation2 + $0x190] sm:$0xff]  ;;  %v718_v21 = vld [vmem:[#allocation2 + $0x3e0] sm:$0xff] }
  0x3e   :  { %167 = vmatprep.mubr.f32.mxu0 %v1561_v0  ;;  %1132 = vmatmul.mubr.f32.gmra.mrb[2].mxu1 %v36_v13 }
  0x3f   :  { %485 = vmatprep.mubr.f32.mxu1 %v1561_v0  ;;  %1374 = vmatpush1.bf16.msra.mxu1 %v1373_v26  ;;  %v1411_v26 = vpack.c.bf16 %v396_v25, %v393_v24  ;;  %v717_v24 = vld [vmem:[#allocation2 + $0x3d8] sm:$0xff] }
  0x40   :  { %1376 = vmatprep.subr.bf16.mxu1 %v1375_v29  ;;  %v1415_v29 = vpack.c.bf16 %v402_v28, %v399_v27  ;;  %v724_v27 = vld [vmem:[#allocation2 + $0x410] sm:$0xff] }
  0x41   :  { %168 = vmatmul.mubr.f32.gmra.mrb[6].mxu0 %v36_v13  ;;  %v378_v13 = vld [vmem:[#allocation2 + $0x1a8] sm:$0xff]  ;;  %v720_v28 = vld [vmem:[#allocation2 + $0x3f0] sm:$0xff] }
  0x42   :  { %1158 = vmatprep.mubr.msk.f32.mxu0 %vm270_vm0, %v259_v14  ;;  %v1399_v14 = vpack.c.bf16 %v378_v13, %v375_v12  ;;  %v705_v12 = vld [vmem:[#allocation2 + $0x378] sm:$0xff]  ;;  %v1477_v31 = vpack.c.bf16 %v723_v30, %v720_v28 }
  0x43   :  { %1378 = vmatpush1.bf16.msra.mxu1 %v1377_v34  ;;  %v414_v34 = vld [vmem:[#allocation2 + $0x2c8] sm:$0xff] }
  0x44   :  { %1380 = vmatprep.subr.bf16.mxu1 %v1379_v35  ;;  %v1423_v35 = vpack.c.bf16 %v414_v34, %v411_v33  ;;  %v730_v33 = vld [vmem:[#allocation2 + $0x440] sm:$0xff] }
  0x45   :  { %v726_v34 = vld [vmem:[#allocation2 + $0x420] sm:$0xff] }
  0x46   :  { %v1481_v37 = vpack.c.bf16 %v729_v36, %v726_v34 }
  0x47   :  { %1382 = vmatpush1.bf16.msra.mxu1 %v1381_v40  ;;  %v418_v40 = vld [vmem:[#allocation2 + $0x2e8] sm:$0xff] }
  0x48   :  { %1384 = vmatprep.subr.bf16.mxu1 %v1383_v41  ;;  %v1397_v41 = vpack.c.bf16 %v418_v40, %v415_v39 }
  0x4b   :  { %1386 = vmatpush1.bf16.msra.mxu1 %v1385_v46 }
  0x4c   :  { %1388 = vmatprep.subr.bf16.mxu1 %v1387_v47 }
  0x4f   :  { %1390 = vmatpush1.bf16.msra.mxu1 %v1389_v52 }
  0x50   :  { %1392 = vmatprep.subr.bf16.mxu1 %v1391_v53 }
  0x53   :  { %1394 = vmatpush1.bf16.msra.mxu1 %v1393_v56 }
  0x54   :  { %1396 = vmatprep.subr.bf16.mxu1 %v1395_v38 }
  0x57   :  { %1398 = vmatpush1.bf16.msra.mxu1 %v1397_v41 }
 0x108   :  { %v151_v57 = vpop.f32.mrb[0].mxu0 }
 0x109   :  { %v153_v58 = vpop.f32.mrb[1].mxu0 }
 0x10c   :  { %v157_v59 = vpop.f32.mrb[2].mxu0 }
 0x10d   :  { %v1343_v60 = vpack.c.bf16 %v157_v59, %v151_v57  ;;  %v159_v61 = vpop.f32.mrb[3].mxu0  ;;  %v1130_v1 = vpop.f32.mrb[0].mxu1  ;;  %v691_v59 = vld [vmem:[#allocation2 + $0x308] sm:$0xff] }
 0x10e   :  { %v1351_v62 = vpack.c.bf16 %v159_v61, %v153_v58  ;;  %v240_v3 = vpop.f32.mrb[1].mxu1  ;;  %v991_v58 = vld [vmem:[%s1677_s2 + $0x20] sm:$0xff] }
 0x10f   :  { %1344 = vmatprep.subr.bf16.mxu0 %v1343_v60  ;;  %v1359_v4 = vpack.c.bf16 %v1130_v1, %v240_v3  ;;  %v690_v61 = vld [vmem:[#allocation2 + $0x300] sm:$0xff]  ;;  %v700_v3 = vld [vmem:[#allocation2 + $0x350] sm:$0xff] }
 0x110   :  { %v163_v63 = vpop.f32.mrb[4].mxu0  ;;  %1346 = vmatpush3.bf16.msra.mxu0 %v1343_v60  ;;  %v694_v60 = vld [vmem:[#allocation2 + $0x320] sm:$0xff] }
 0x111   :  { %v165_v2 = vpop.f32.mrb[5].mxu0  ;;  %v1133_v6 = vpop.f32.mrb[2].mxu1 }
 0x112   :  { %v250_v9 = vpop.f32.mrb[3].mxu1 }
 0x113   :  { %v1363_v11 = vpack.c.bf16 %v1133_v6, %v250_v9  ;;  %v699_v6 = vld [vmem:[#allocation2 + $0x348] sm:$0xff]  ;;  %v706_v9 = vld [vmem:[#allocation2 + $0x380] sm:$0xff] }
 0x114   :  { %v169_v5 = vpop.f32.mrb[6].mxu0 }
 0x115   :  { %v1347_v7 = vpack.c.bf16 %v169_v5, %v163_v63  ;;  %v171_v8 = vpop.f32.mrb[7].mxu0  ;;  %v693_v63 = vld [vmem:[#allocation2 + $0x318] sm:$0xff] }
 0x116   :  { %v1355_v10 = vpack.c.bf16 %v171_v8, %v165_v2  ;;  %v1457_v1 = vpack.c.bf16 %v693_v63, %v690_v61  ;;  %v697_v2 = vld [vmem:[#allocation2 + $0x338] sm:$0xff]  ;;  %v703_v8 = vld [vmem:[#allocation2 + $0x368] sm:$0xff]  ;;  %v704_v63 = vld [vmem:[#allocation2 + $0x370] sm:$0xff] }
 0x117   :  { %1348 = vmatprep.subr.bf16.mxu0 %v1347_v7  ;;  %v1459_v5 = vpack.c.bf16 %v700_v3, %v697_v2  ;;  %v992_v61 = vld [vmem:[%s1677_s2 + $0x28] sm:$0xff]  ;;  %v710_v3 = vld [vmem:[#allocation2 + $0x3a0] sm:$0xff] }
 0x118   :  { %1350 = vmatpush3.bf16.msra.mxu0 %v1347_v7 }
 0x119   :  { %1352 = vmatprep.subr.bf16.mxu0 %v1351_v62 }
 0x11c   :  { %1354 = vmatpush3.bf16.msra.mxu0 %v1351_v62  ;;  %v1455_v62 = vpack.c.bf16 %v694_v60, %v691_v59  ;;  %v698_v59 = vld [vmem:[#allocation2 + $0x340] sm:$0xff]  ;;  %v701_v60 = vld [vmem:[#allocation2 + $0x358] sm:$0xff] }
 0x11d   :  { %1356 = vmatprep.subr.bf16.mxu0 %v1355_v10 }
 0x120   :  { %1358 = vmatpush3.bf16.msra.mxu0 %v1355_v10  ;;  %v702_v10 = vld [vmem:[#allocation2 + $0x360] sm:$0xff] }
 0x121   :  { %1360 = vmatprep.subr.bf16.mxu0 %v1359_v4  ;;  %v1465_v13 = vpack.c.bf16 %v705_v12, %v702_v10  ;;  %v725_v10 = vld [vmem:[#allocation2 + $0x418] sm:$0xff]  ;;  %v728_v12 = vld [vmem:[#allocation2 + $0x430] sm:$0xff] }
 0x124   :  { %1362 = vmatpush3.bf16.msra.mxu0 %v1359_v4  ;;  %v696_v4 = vld [vmem:[#allocation2 + $0x330] sm:$0xff] }
 0x125   :  { %1364 = vmatprep.subr.bf16.mxu0 %v1363_v11  ;;  %v1461_v7 = vpack.c.bf16 %v699_v6, %v696_v4  ;;  %v713_v4 = vld [vmem:[#allocation2 + $0x3b8] sm:$0xff]  ;;  %v716_v6 = vld [vmem:[#allocation2 + $0x3d0] sm:$0xff] }
 0x128   :  { %1366 = vmatpush3.bf16.msra.mxu0 %v1363_v11  ;;  %v1463_v11 = vpack.c.bf16 %v706_v9, %v703_v8  ;;  %v722_v9 = vld [vmem:[#allocation2 + $0x400] sm:$0xff] }
 0x129   :  { %1400 = vmatprep.subr.bf16.mxu0 %v1399_v14 }
 0x12b   :  { %1159 = vmatmul.mubr.msk.f32.vlgmr.msra.gmra.mrb[8].mxu0 %vm270_vm0, %v260_v17 }
 0x12c   :  { %1161 = vmatprep.mubr.msk.f32.mxu0 %vm270_vm0, %v261_v18  ;;  %1402 = vmatpush3.bf16.msra.mxu0 %v1399_v14  ;;  %v709_v14 = vld [vmem:[#allocation2 + $0x398] sm:$0xff]  ;;  %v711_v18 = vld [vmem:[#allocation2 + $0x3a8] sm:$0xff] }
 0x12d   :  { %1404 = vmatprep.subr.bf16.mxu0 %v1403_v19  ;;  %v1467_v17 = vpack.c.bf16 %v712_v15, %v709_v14  ;;  %v733_v15 = vld [vmem:[#allocation2 + $0x458] sm:$0xff] }
 0x12f   :  { %1162 = vmatmul.mubr.msk.f32.gmra.mrb[10].mxu0 %vm270_vm0, %v262_v22  ;;  %v714_v22 = vld [vmem:[#allocation2 + $0x3c0] sm:$0xff] }
 0x130   :  { %1406 = vmatpush3.bf16.msra.mxu0 %v1403_v19  ;;  %v1469_v19 = vpack.c.bf16 %v711_v18, %v708_v16  ;;  %v1473_v25 = vpack.c.bf16 %v717_v24, %v714_v22  ;;  %v736_v16 = vld [vmem:[#allocation2 + $0x470] sm:$0xff]  ;;  %v737_v22 = vld [vmem:[#allocation2 + $0x478] sm:$0xff]  ;;  %v994_v24 = vld [vmem:[%s1678_s3 + $0x1] ss:$0 sm:$0xff] }
 0x131   :  { %1408 = vmatprep.subr.bf16.mxu0 %v1407_v23  ;;  %v732_v18 = vld [vmem:[#allocation2 + $0x450] sm:$0xff] }
 0x134   :  { %1410 = vmatpush3.bf16.msra.mxu0 %v1407_v23  ;;  %v1471_v23 = vpack.c.bf16 %v718_v21, %v715_v20  ;;  %v734_v21 = vld [vmem:[#allocation2 + $0x460] sm:$0xff] }
 0x135   :  { %1412 = vmatprep.subr.bf16.mxu0 %v1411_v26 }
 0x138   :  { %1414 = vmatpush3.bf16.msra.mxu0 %v1411_v26  ;;  %v721_v26 = vld [vmem:[#allocation2 + $0x3f8] sm:$0xff] }
 0x139   :  { %1416 = vmatprep.subr.bf16.mxu0 %v1415_v29 }
 0x13c   :  { %1418 = vmatpush3.bf16.msra.mxu0 %v1415_v29  ;;  %v1475_v29 = vpack.c.bf16 %v724_v27, %v721_v26 }
 0x13d   :  { %1420 = vmatprep.subr.bf16.mxu0 %v1419_v32 }
 0x140   :  { %1422 = vmatpush3.bf16.msra.mxu0 %v1419_v32  ;;  %v727_v32 = vld [vmem:[#allocation2 + $0x428] sm:$0xff] }
 0x141   :  { %1424 = vmatprep.subr.bf16.mxu0 %v1423_v35 }
 0x144   :  { %1426 = vmatpush3.bf16.msra.mxu0 %v1423_v35  ;;  %v1479_v35 = vpack.c.bf16 %v730_v33, %v727_v32 }
 0x145   :  { %1428 = vmatprep.subr.bf16.mxu0 %v1427_v44 }
 0x148   :  { %1430 = vmatpush3.bf16.msra.mxu0 %v1427_v44 }
 0x149   :  { %1456 = vmatprep.subr.bf16.mxu0 %v1455_v62  ;;  %v1491_v62 = vpack.c.bf16 %v701_v60, %v698_v59 }
 0x1fe   :  { %v1160_v46 = vpop.f32.mrb[8].mxu0 }
 0x1ff   :  { %v355_v47 = vadd.f32 %v1160_v46, %v986_v45  ;;  %v349_v48 = vpop.f32.mrb[9].mxu0 }
 0x200   :  { %v350_v49 = vadd.f32 %v986_v45, %v349_v48 }
 0x201   :  { %v369_v52 = vmax.f32 %v355_v47, 0.0 }
 0x202   :  { %v368_v50 = vmax.f32 %v350_v49, 0.0  ;;  %v1163_v51 = vpop.f32.mrb[10].mxu0 }
 0x203   :  { %v365_v53 = vadd.f32 %v1163_v51, %v986_v45  ;;  %v359_v54 = vpop.f32.mrb[11].mxu0 }
 0x204   :  { %v360_v55 = vadd.f32 %v986_v45, %v359_v54  ;;  %486 = vmatmul.mubr.f32.vlgmr.msra.gmra.mrb[4].mxu1 %v368_v50  ;;  %1196 = vmatprep.mubr.f32.mxu0 %v368_v50 }
 0x205   :  { %v371_v56 = vmax.f32 %v365_v53, 0.0  ;;  %1197 = vmatmul.mubr.f32.vlgmr.msra.gmra.mrb[12].mxu0 %v369_v52  ;;  %491 = vmatprep.mubr.f32.mxu1 %v1561_v0 }
 0x206   :  { %v370_v57 = vmax.f32 %v360_v55, 0.0  ;;  %1458 = vmatpush1.bf16.msra.mxu0 %v1457_v1  ;;  %v707_v1 = vld [vmem:[#allocation2 + $0x388] sm:$0xff] }
 0x207   :  { %1460 = vmatprep.subr.bf16.mxu0 %v1459_v5  ;;  %v1495_v2 = vpack.c.bf16 %v707_v1, %v704_v63  ;;  %v1499_v5 = vpack.c.bf16 %v713_v4, %v710_v3 }
 0x208   :  { %492 = vmatmul.mubr.f32.gmra.mrb[6].mxu1 %v369_v52  ;;  %1199 = vmatprep.mubr.f32.mxu0 %v370_v57 }
 0x209   :  { %1200 = vmatmul.mubr.f32.gmra.mrb[14].mxu0 %v371_v56  ;;  %497 = vmatprep.mubr.f32.mxu1 %v1561_v0 }
 0x20a   :  { %802 = vmatprep.mubr.f32.mxu0 %v1561_v0  ;;  %1462 = vmatpush1.bf16.msra.mxu0 %v1461_v7  ;;  %v719_v7 = vld [vmem:[#allocation2 + $0x3e8] sm:$0xff] }
 0x20b   :  { %1464 = vmatprep.subr.bf16.mxu0 %v1463_v11  ;;  %v1503_v8 = vpack.c.bf16 %v719_v7, %v716_v6  ;;  %v1507_v11 = vpack.c.bf16 %v725_v10, %v722_v9 }
 0x20c   :  { %498 = vmatmul.mubr.f32.gmra.mrb[8].mxu1 %v370_v57  ;;  %v695_v57 = vld [vmem:[#allocation2 + $0x328] sm:$0xff] }
 0x20d   :  { %503 = vmatprep.mubr.f32.mxu1 %v1561_v0 }
 0x20e   :  { %1466 = vmatpush1.bf16.msra.mxu0 %v1465_v13  ;;  %v731_v13 = vld [vmem:[#allocation2 + $0x448] sm:$0xff] }
 0x20f   :  { %1468 = vmatprep.subr.bf16.mxu0 %v1467_v17  ;;  %v1511_v14 = vpack.c.bf16 %v731_v13, %v728_v12  ;;  %v1483_v17 = vpack.c.bf16 %v736_v16, %v733_v15 }
 0x210   :  { %504 = vmatmul.mubr.f32.gmra.mrb[10].mxu1 %v371_v56  ;;  %v692_v56 = vld [vmem:[#allocation2 + $0x310] sm:$0xff] }
 0x211   :  { %1226 = vmatprep.mubr.msk.f32.mxu1 %vm270_vm0, %v991_v58  ;;  %v1487_v58 = vpack.c.bf16 %v695_v57, %v692_v56 }
 0x212   :  { %1470 = vmatpush1.bf16.msra.mxu0 %v1469_v19  ;;  %v735_v19 = vld [vmem:[#allocation2 + $0x468] sm:$0xff] }
 0x213   :  { %1472 = vmatprep.subr.bf16.mxu0 %v1471_v23  ;;  %v1485_v20 = vpack.c.bf16 %v735_v19, %v732_v18  ;;  %v1515_v23 = vpack.c.bf16 %v737_v22, %v734_v21 }
 0x216   :  { %1474 = vmatpush1.bf16.msra.mxu0 %v1473_v25 }
 0x217   :  { %1476 = vmatprep.subr.bf16.mxu0 %v1475_v29 }
 0x21a   :  { %1478 = vmatpush1.bf16.msra.mxu0 %v1477_v31  ;;  %v1562_v31 = vmov 0.0|0.0  }
 0x21b   :  { %1480 = vmatprep.subr.bf16.mxu0 %v1479_v35 }
 0x21e   :  { %1482 = vmatpush1.bf16.msra.mxu0 %v1481_v37 }
 0x21f   :  { %1484 = vmatprep.subr.bf16.mxu0 %v1483_v17 }
 0x222   :  { %1486 = vmatpush1.bf16.msra.mxu0 %v1485_v20 }
 0x223   :  { %1519 = vmatprep.subr.bf16.mxu0 %v1562_v31 }
 0x2d7   :  { %v487_v38 = vpop.f32.mrb[4].mxu1 }
 0x2d8   :  { %v489_v39 = vpop.f32.mrb[5].mxu1  ;;  %v1198_v40 = vpop.f32.mrb[12].mxu0 }
 0x2d9   :  { %v576_v41 = vpop.f32.mrb[13].mxu0 }
 0x2da   :  { %v1447_v42 = vpack.c.bf16 %v1198_v40, %v576_v41  ;;  %v997_v41 = vld [vmem:[%s1677_s2 + $0x40] sm:$0xff] }
 0x2db   :  { %v493_v43 = vpop.f32.mrb[6].mxu1 }
 0x2dc   :  { %v1431_v44 = vpack.c.bf16 %v493_v43, %v487_v38  ;;  %v495_v45 = vpop.f32.mrb[7].mxu1  ;;  %v1201_v46 = vpop.f32.mrb[14].mxu0 }
 0x2dd   :  { %v1439_v47 = vpack.c.bf16 %v495_v45, %v489_v39  ;;  %v586_v48 = vpop.f32.mrb[15].mxu0 }
 0x2de   :  { %v1451_v49 = vpack.c.bf16 %v1201_v46, %v586_v48  ;;  %1432 = vmatprep.subr.bf16.mxu1 %v1431_v44 }
 0x2df   :  { %v499_v50 = vpop.f32.mrb[8].mxu1  ;;  %1434 = vmatpush3.bf16.msra.mxu1 %v1431_v44 }
 0x2e0   :  { %v501_v51 = vpop.f32.mrb[9].mxu1 }
 0x2e3   :  { %v505_v52 = vpop.f32.mrb[10].mxu1 }
 0x2e4   :  { %v1435_v53 = vpack.c.bf16 %v505_v52, %v499_v50  ;;  %v507_v54 = vpop.f32.mrb[11].mxu1 }
 0x2e5   :  { %v1443_v55 = vpack.c.bf16 %v507_v54, %v501_v51 }
 0x2e6   :  { %1436 = vmatprep.subr.bf16.mxu1 %v1435_v53 }
 0x2e7   :  { %1438 = vmatpush3.bf16.msra.mxu1 %v1435_v53 }
 0x2e8   :  { %1440 = vmatprep.subr.bf16.mxu1 %v1439_v47 }
 0x2eb   :  { %1442 = vmatpush3.bf16.msra.mxu1 %v1439_v47 }
 0x2ec   :  { %1444 = vmatprep.subr.bf16.mxu1 %v1443_v55 }
 0x2ef   :  { %1446 = vmatpush3.bf16.msra.mxu1 %v1443_v55 }
 0x2f0   :  { %1448 = vmatprep.subr.bf16.mxu1 %v1447_v42 }
 0x2f3   :  { %1450 = vmatpush3.bf16.msra.mxu1 %v1447_v42 }
 0x2f4   :  { %1452 = vmatprep.subr.bf16.mxu1 %v1451_v49 }
 0x2f7   :  { %1454 = vmatpush3.bf16.msra.mxu1 %v1451_v49 }
 0x2f8   :  { %1488 = vmatprep.subr.bf16.mxu1 %v1487_v58 }
 0x2fa   :  { %1227 = vmatmul.mubr.msk.f32.vlgmr.msra.gmra.mrb[12].mxu1 %vm270_vm0, %v992_v61 }
 0x2fb   :  { %1490 = vmatpush3.bf16.msra.mxu1 %v1487_v58 }
 0x2fc   :  { %1492 = vmatprep.subr.bf16.mxu1 %v1491_v62 }
 0x2ff   :  { %1494 = vmatpush3.bf16.msra.mxu1 %v1491_v62 }
 0x300   :  { %1496 = vmatprep.subr.bf16.mxu1 %v1495_v2 }
 0x303   :  { %1498 = vmatpush3.bf16.msra.mxu1 %v1495_v2 }
 0x304   :  { %1500 = vmatprep.subr.bf16.mxu1 %v1499_v5 }
 0x307   :  { %1502 = vmatpush3.bf16.msra.mxu1 %v1499_v5 }
 0x308   :  { %1504 = vmatprep.subr.bf16.mxu1 %v1503_v8 }
 0x30b   :  { %1506 = vmatpush3.bf16.msra.mxu1 %v1503_v8 }
 0x30c   :  { %1508 = vmatprep.subr.bf16.mxu1 %v1507_v11 }
 0x30f   :  { %1510 = vmatpush3.bf16.msra.mxu1 %v1507_v11 }
 0x310   :  { %1512 = vmatprep.subr.bf16.mxu1 %v1511_v14 }
 0x313   :  { %1514 = vmatpush3.bf16.msra.mxu1 %v1511_v14 }
 0x314   :  { %1516 = vmatprep.subr.bf16.mxu1 %v1515_v23 }
 0x317   :  { %1518 = vmatpush3.bf16.msra.mxu1 %v1515_v23 }
 0x3cd   :  { %v1228_v25 = vpop.f32.mrb[12].mxu1 }
 0x3ce   :  { %v684_v26 = vadd.f32 %v1228_v25, %v994_v24  ;;  %v678_v27 = vpop.f32.mrb[13].mxu1 }
 0x3cf   :  { %v679_v28 = vadd.f32 %v994_v24, %v678_v27 }
 0x3d0   :  { %v688_v29 = vmax.f32 %v684_v26, 0.0 }
 0x3d1   :  { %v687_v30 = vmax.f32 %v679_v28, 0.0 }
 0x3d2   :  { %975 = vst [vmem:[%s1679_s4 + $0x8] sm:$0xff] %v688_v29 }
 0x3d3   :  { %974 = vst [vmem:[%s1679_s4] sm:$0xff] %v687_v30  ;;  %803 = vmatmul.mubr.f32.vlgmr.msra.gmra.mrb[16].mxu0 %v687_v30  ;;  %1261 = vmatprep.mubr.f32.mxu1 %v687_v30 }
 0x3d4   :  { %1262 = vmatmul.mubr.f32.vlgmr.msra.gmra.mrb[14].mxu1 %v688_v29  ;;  %808 = vmatprep.mubr.f32.mxu0 %v1561_v0 }
 0x3d7   :  { %809 = vmatmul.mubr.f32.gmra.mrb[18].mxu0 %v688_v29 }
 0x3d8   :  { %1276 = vmatprep.mubr.msk.f32.mxu0 %vm1563_vm1, %v1561_v0  ;;  %v999_v0 = vld [vmem:[%s1678_s3 + $0x2] ss:$0 sm:$0xff] }
 0x4a6   :  { %v804_v32 = vpop.f32.mrb[16].mxu0 }
 0x4a7   :  { %v806_v33 = vpop.f32.mrb[17].mxu0  ;;  %v1263_v34 = vpop.f32.mrb[14].mxu1 }
 0x4a8   :  { %v881_v35 = vpop.f32.mrb[15].mxu1 }
 0x4a9   :  { %v1526_v36 = vpack.c.bf16 %v1263_v34, %v881_v35 }
 0x4aa   :  { %v810_v37 = vpop.f32.mrb[18].mxu0 }
 0x4ab   :  { %v1520_v38 = vpack.c.bf16 %v810_v37, %v804_v32  ;;  %v812_v39 = vpop.f32.mrb[19].mxu0 }
 0x4ac   :  { %v1523_v40 = vpack.c.bf16 %v812_v39, %v806_v33 }
 0x4ad   :  { %1521 = vmatpush3.bf16.msra.mxu0 %v1520_v38 }
 0x4ae   :  { %1522 = vmatprep.subr.bf16.mxu0 %v1562_v31 }
 0x4b1   :  { %1524 = vmatpush3.bf16.msra.mxu0 %v1523_v40 }
 0x4b2   :  { %1525 = vmatprep.subr.bf16.mxu0 %v1562_v31 }
 0x4b5   :  { %1527 = vmatpush3.bf16.msra.mxu0 %v1526_v36 }
 0x4b8   :  { %1277 = vmatmul.mubr.msk.f32.vlgmr.msra.gmra.mrb[20].mxu0 %vm270_vm0, %v997_v41 }
 0x58b   :  { %v969_v42 = vpop.f32.mrb[20].mxu0 }
 0x58c   :  { %v970_v43 = vadd.f32 %v999_v0, %v969_v42  ;;  %v1278_v44 = vpop.f32.mrb[21].mxu0 }
 0x58e   :  { %v973_v45 = vmax.f32 %v970_v43, 0.0 }
 0x590   :  { %976 = vst [vmem:[%s1680_s5] sm:$0xff] %v973_v45 }
 0x591   :  { %985 = vsyncpa [#allocation3], 1 }

</bundles_post_ra>
